<compile_context>
chip_gen: v7x
topology: tpu7x:2x2x1
jax: 0.10.0
libtpu: 0.0.40
codegen_flags: <defaults>
</compile_context>

<pallas_src>
import functools

import jax
import jax.numpy as jnp
from jax.experimental import pallas as pl
from jax.experimental.pallas import tpu as pltpu


def _round_up(x, m):
    return ((x + m - 1) // m) * m


def _mm_head_kernel(text_h_ref, img_f_ref,
                    wt_ref, bt_ref,
                    wi_ref, bi_ref,
                    wc_ref, bc_ref,
                    out_ref, acc_ref, *, seq_len):
    s = pl.program_id(1)

    # --- init pooled-sum accumulator on the first seq chunk ----------------
    @pl.when(s == 0)
    def _():
        acc_ref[...] = jnp.zeros_like(acc_ref)

    # --- chunked sequence sum (f32 accumulation, no full f32 text copy) ----
    acc_ref[...] += jnp.sum(text_h_ref[...], axis=1, dtype=jnp.float32)

    # --- finalize: fc layers + fusion + classifier on the last seq chunk ---
    @pl.when(s == pl.num_programs(1) - 1)
    def _():
        pooled_text = acc_ref[...] * jnp.float32(1.0 / seq_len)       # [TB, Dt] f32

        text_feats = jnp.dot(pooled_text.astype(wt_ref.dtype), wt_ref[...],
                             preferred_element_type=jnp.float32)
        text_feats = text_feats + bt_ref[...].astype(jnp.float32)

        image_feats = jnp.dot(img_f_ref[...], wi_ref[...],
                              preferred_element_type=jnp.float32)
        image_feats = image_feats + bi_ref[...].astype(jnp.float32)

        features = (text_feats + image_feats) * jnp.float32(0.5)      # both modalities

        logits = jnp.dot(features.astype(wc_ref.dtype), wc_ref[...],
                         preferred_element_type=jnp.float32)
        logits = logits + bc_ref[...].astype(jnp.float32)
        out_ref[...] = logits.astype(out_ref.dtype)


def multimodal_classifier_head(text_hidden, image_feat, params,
                               *, max_tile_b=128,
                               text_block_budget_bytes=4 << 20):
    """Fused Pallas head.

    text_hidden : [B, S, text_feat_dim]  (last_hidden_state of text_model)
    image_feat  : [B, image_feat_dim]    (output of image_model)
    params      : dict with wt/bt/wi/bi/wc/bc, weights stored [in, out].
    """
    B, S, Dt = text_hidden.shape
    Di = image_feat.shape[1]
    H = params["wt"].shape[1]
    C = params["wc"].shape[1]

    # Lane-dense padding of hidden / class dims (unmasked vst on the output,
    # no hidden lane padding inside the kernel).
    H_pad = _round_up(H, 128)
    C_pad = _round_up(C, 128)

    # ---- tile selection ----------------------------------------------------
    text_itemsize = jnp.dtype(text_hidden.dtype).itemsize
    if B <= max_tile_b:
        tile_b = B                       # full batch in one tile
    else:
        tile_b = max(8, (max_tile_b // 8) * 8)   # sublane-aligned batch tile
    B_pad = _round_up(B, tile_b)

    max_s = max(1, text_block_budget_bytes // max(1, tile_b * Dt * text_itemsize))
    if max_s >= S:
        tile_s = S                       # whole sequence fits in one chunk
    else:
        tile_s = max(8, (max_s // 8) * 8)
    S_pad = _round_up(S, tile_s)

    # ---- zero-padding (padded seq rows add 0 to the sum; padded batch rows
    # and padded H/C columns are sliced off / multiply into zeros) ------------
    text_p = text_hidden
    if (B_pad, S_pad) != (B, S):
        text_p = jnp.pad(text_hidden, ((0, B_pad - B), (0, S_pad - S), (0, 0)))
    img_p = image_feat if B_pad == B else jnp.pad(image_feat, ((0, B_pad - B), (0, 0)))

    wt = jnp.pad(params["wt"], ((0, 0), (0, H_pad - H)))
    bt = jnp.pad(params["bt"], ((0, 0), (0, H_pad - H)))
    wi = jnp.pad(params["wi"], ((0, 0), (0, H_pad - H)))
    bi = jnp.pad(params["bi"], ((0, 0), (0, H_pad - H)))
    wc = jnp.pad(params["wc"], ((0, H_pad - H), (0, C_pad - C)))
    bc = jnp.pad(params["bc"], ((0, 0), (0, C_pad - C)))

    grid = (B_pad // tile_b, S_pad // tile_s)

    # ---- explicit VMEM budget (double-buffered blocks + resident weights) ---
    w_itemsize = jnp.dtype(wt.dtype).itemsize
    est = 2 * tile_b * tile_s * Dt * text_itemsize                       # text stream
    est += 2 * tile_b * Di * jnp.dtype(image_feat.dtype).itemsize        # image feats
    est += 2 * (Dt * H_pad + Di * H_pad + H_pad * C_pad
                + 2 * H_pad + C_pad) * w_itemsize                        # weights/biases
    est += 2 * tile_b * C_pad * 4                                        # output block
    est += tile_b * Dt * 4                                               # accumulator
    vmem_limit = int(min(max(2 * est, 16 << 20), 48 << 20))              # v7x-safe cap

    kernel = functools.partial(_mm_head_kernel, seq_len=S)

    out = pl.pallas_call(
        kernel,
        out_shape=jax.ShapeDtypeStruct((B_pad, C_pad), jnp.float32),
        grid_spec=pltpu.PrefetchScalarGridSpec(
            num_scalar_prefetch=0,
            grid=grid,
            in_specs=[
                # streamed activation: new block every (b, s)
                pl.BlockSpec((tile_b, tile_s, Dt), lambda b, s: (b, s, 0)),
                # image features: per batch tile, constant over seq chunks
                pl.BlockSpec((tile_b, Di), lambda b, s: (b, 0)),
                # loop-invariant weights/biases: constant index -> VMEM-resident
                pl.BlockSpec((Dt, H_pad), lambda b, s: (0, 0)),
                pl.BlockSpec((1, H_pad), lambda b, s: (0, 0)),
                pl.BlockSpec((Di, H_pad), lambda b, s: (0, 0)),
                pl.BlockSpec((1, H_pad), lambda b, s: (0, 0)),
                pl.BlockSpec((H_pad, C_pad), lambda b, s: (0, 0)),
                pl.BlockSpec((1, C_pad), lambda b, s: (0, 0)),
            ],
            # output block resident across the (arbitrary) seq axis
            out_specs=pl.BlockSpec((tile_b, C_pad), lambda b, s: (b, 0)),
            scratch_shapes=[pltpu.VMEM((tile_b, Dt), jnp.float32)],
        ),
        compiler_params=pltpu.CompilerParams(
            dimension_semantics=("parallel", "arbitrary"),
            vmem_limit_bytes=vmem_limit,
        ),
    )(text_p, img_p, wt, bt, wi, bi, wc, bc)

    return out[:B, :C]


def init_params(key, text_feat_dim, image_feat_dim, hidden_dim, num_classes):
    """Deterministic nn.Linear-style init; weights stored as [in, out]."""
    ks = jax.random.split(key, 6)

    def linear(kw, kb, fan_in, fan_out):
        bound = 1.0 / jnp.sqrt(jnp.float32(fan_in))
        w = jax.random.uniform(kw, (fan_in, fan_out), jnp.float32, -bound, bound)
        b = jax.random.uniform(kb, (1, fan_out), jnp.float32, -bound, bound)
        return w, b

    wt, bt = linear(ks[0], ks[1], text_feat_dim, hidden_dim)
    wi, bi = linear(ks[2], ks[3], image_feat_dim, hidden_dim)
    wc, bc = linear(ks[4], ks[5], hidden_dim, num_classes)
    return {"wt": wt, "bt": bt, "wi": wi, "bi": bi, "wc": wc, "bc": bc}


def reference_head(text_hidden, image_feat, p):
    pooled = jnp.mean(text_hidden.astype(jnp.float32), axis=1)
    tf = pooled @ p["wt"] + p["bt"]
    imf = image_feat @ p["wi"] + p["bi"]
    feats = (tf + imf) / 2.0
    return feats @ p["wc"] + p["bc"]


if __name__ == "__main__":
    # TODO(synk): text_model / image_model backbones are external pretrained
    # encoders; their outputs are synthesized here instead of being computed.
    B, S = 2, 8
    TEXT_FEAT_DIM, IMAGE_FEAT_DIM = 32, 64
    HIDDEN_DIM, NUM_CLASSES = 32, 8

    key = jax.random.PRNGKey(0)
    k_text, k_img, k_param = jax.random.split(key, 3)

    text_hidden = jax.random.normal(k_text, (B, S, TEXT_FEAT_DIM), jnp.float32)
    image_feat = jax.random.normal(k_img, (B, IMAGE_FEAT_DIM), jnp.float32)
    params = init_params(k_param, TEXT_FEAT_DIM, IMAGE_FEAT_DIM,
                         HIDDEN_DIM, NUM_CLASSES)

    logits = multimodal_classifier_head(text_hidden, image_feat, params)
    logits = jax.block_until_ready(logits)

    ref = reference_head(text_hidden, image_feat, params)
    assert logits.shape == (B, NUM_CLASSES)
    assert jnp.allclose(logits, ref, atol=1e-5, rtol=1e-5)

    print("KERNEL_OK")
</pallas_src>

<mosaic_0001>
module attributes {stable_mosaic.version = 11 : i64} {
  func.func @_mm_head_kernel(%arg0: i32, %arg1: i32, %arg2: memref<2x8x32xf32, #tpu.memory_space<vmem>>, %arg3: memref<2x64xf32, #tpu.memory_space<vmem>>, %arg4: memref<32x128xf32, #tpu.memory_space<vmem>>, %arg5: memref<1x128xf32, #tpu.memory_space<vmem>>, %arg6: memref<64x128xf32, #tpu.memory_space<vmem>>, %arg7: memref<1x128xf32, #tpu.memory_space<vmem>>, %arg8: memref<128x128xf32, #tpu.memory_space<vmem>>, %arg9: memref<1x128xf32, #tpu.memory_space<vmem>>, %arg10: memref<2x128xf32, #tpu.memory_space<vmem>>, %arg11: memref<2x32xf32, #tpu.memory_space<vmem>>) attributes {dimension_semantics = [#tpu.dimension_semantics<parallel>, #tpu.dimension_semantics<arbitrary>], iteration_bounds = array<i64: 1, 1>, scalar_prefetch = 0 : i64, scratch_operands = 1 : i64, tpu.core_type = #tpu.core_type<tc>, window_params = [{transform_indices = @transform_0, window_bounds = array<i64: 2, 8, 32>}, {transform_indices = @transform_1, window_bounds = array<i64: 2, 64>}, {pipeline_mode = #tpu.pipeline_mode<synchronous>, transform_indices = @transform_2, window_bounds = array<i64: 32, 128>}, {pipeline_mode = #tpu.pipeline_mode<synchronous>, transform_indices = @transform_3, window_bounds = array<i64: 1, 128>}, {pipeline_mode = #tpu.pipeline_mode<synchronous>, transform_indices = @transform_4, window_bounds = array<i64: 64, 128>}, {pipeline_mode = #tpu.pipeline_mode<synchronous>, transform_indices = @transform_5, window_bounds = array<i64: 1, 128>}, {pipeline_mode = #tpu.pipeline_mode<synchronous>, transform_indices = @transform_6, window_bounds = array<i64: 128, 128>}, {pipeline_mode = #tpu.pipeline_mode<synchronous>, transform_indices = @transform_7, window_bounds = array<i64: 1, 128>}, {transform_indices = @transform_8, window_bounds = array<i64: 2, 128>}]} {
    %c0_i32 = arith.constant 0 : i32
    %0 = arith.cmpi eq, %arg1, %c0_i32 : i32
    %1 = arith.extui %0 : i1 to i32
    %c0_i32_0 = arith.constant 0 : i32
    %2 = arith.cmpi ne, %1, %c0_i32_0 : i32
    scf.if %2 {
      %cst_9 = arith.constant 0.000000e+00 : f32
      %11 = vector.broadcast %cst_9 : f32 to vector<2x32xf32>
      %c0_10 = arith.constant 0 : index
      %c0_11 = arith.constant 0 : index
      %12 = vector.load %arg11[%c0_10, %c0_11] : memref<2x32xf32, #tpu.memory_space<vmem>>, vector<2x32xf32>
      tpu.vector_store %arg11[%c0_10, %c0_11], %11 {strides = array<i32>} : memref<2x32xf32, #tpu.memory_space<vmem>>, vector<2x32xf32>,
    } else {
    }
    %c0 = arith.constant 0 : index
    %c0_1 = arith.constant 0 : index
    %3 = vector.load %arg11[%c0, %c0_1] : memref<2x32xf32, #tpu.memory_space<vmem>>, vector<2x32xf32>
    %c0_2 = arith.constant 0 : index
    %c0_3 = arith.constant 0 : index
    %c0_4 = arith.constant 0 : index
    %4 = vector.load %arg2[%c0_2, %c0_3, %c0_4] : memref<2x8x32xf32, #tpu.memory_space<vmem>>, vector<2x8x32xf32>
    %cst = arith.constant dense<0.000000e+00> : vector<2x32xf32>
    %5 = vector.multi_reduction <add>, %4, %cst [1] : vector<2x8x32xf32> to vector<2x32xf32>
    %6 = arith.addf %3, %5 : vector<2x32xf32>
    %c0_5 = arith.constant 0 : index
    %c0_6 = arith.constant 0 : index
    %7 = vector.load %arg11[%c0_5, %c0_6] : memref<2x32xf32, #tpu.memory_space<vmem>>, vector<2x32xf32>
    tpu.vector_store %arg11[%c0_5, %c0_6], %6 {strides = array<i32>} : memref<2x32xf32, #tpu.memory_space<vmem>>, vector<2x32xf32>,
    %c0_i32_7 = arith.constant 0 : i32
    %8 = arith.cmpi eq, %arg1, %c0_i32_7 : i32
    %9 = arith.extui %8 : i1 to i32
    %c0_i32_8 = arith.constant 0 : i32
    %10 = arith.cmpi ne, %9, %c0_i32_8 : i32
    scf.if %10 {
      %c0_9 = arith.constant 0 : index
      %c0_10 = arith.constant 0 : index
      %11 = vector.load %arg11[%c0_9, %c0_10] : memref<2x32xf32, #tpu.memory_space<vmem>>, vector<2x32xf32>
      %cst_11 = arith.constant 1.250000e-01 : f32
      %12 = vector.broadcast %cst_11 : f32 to vector<2x32xf32>
      %13 = arith.mulf %11, %12 : vector<2x32xf32>
      %c0_12 = arith.constant 0 : index
      %c0_13 = arith.constant 0 : index
      %14 = vector.load %arg4[%c0_12, %c0_13] : memref<32x128xf32, #tpu.memory_space<vmem>>, vector<32x128xf32>
      %cst_14 = arith.constant dense<0.000000e+00> : vector<2x128xf32>
      %15 = tpu.matmul %13, %14, %cst_14 {dimension_numbers = #tpu.dot_dimension_numbers<[1], [0], [0], [1], [0, 0, 1, 1], [], []>} : vector<2x32xf32>, vector<32x128xf32>, vector<2x128xf32> -> vector<2x128xf32>
      %c0_15 = arith.constant 0 : index
      %c0_16 = arith.constant 0 : index
      %16 = vector.load %arg5[%c0_15, %c0_16] : memref<1x128xf32, #tpu.memory_space<vmem>>, vector<1x128xf32>
      %17 = vector.broadcast %16 : vector<1x128xf32> to vector<2x128xf32>
      %18 = arith.addf %15, %17 : vector<2x128xf32>
      %c0_17 = arith.constant 0 : index
      %c0_18 = arith.constant 0 : index
      %19 = vector.load %arg3[%c0_17, %c0_18] : memref<2x64xf32, #tpu.memory_space<vmem>>, vector<2x64xf32>
      %c0_19 = arith.constant 0 : index
      %c0_20 = arith.constant 0 : index
      %20 = vector.load %arg6[%c0_19, %c0_20] : memref<64x128xf32, #tpu.memory_space<vmem>>, vector<64x128xf32>
      %cst_21 = arith.constant dense<0.000000e+00> : vector<2x128xf32>
      %21 = tpu.matmul %19, %20, %cst_21 {dimension_numbers = #tpu.dot_dimension_numbers<[1], [0], [0], [1], [0, 0, 1, 1], [], []>} : vector<2x64xf32>, vector<64x128xf32>, vector<2x128xf32> -> vector<2x128xf32>
      %c0_22 = arith.constant 0 : index
      %c0_23 = arith.constant 0 : index
      %22 = vector.load %arg7[%c0_22, %c0_23] : memref<1x128xf32, #tpu.memory_space<vmem>>, vector<1x128xf32>
      %23 = vector.broadcast %22 : vector<1x128xf32> to vector<2x128xf32>
      %24 = arith.addf %21, %23 : vector<2x128xf32>
      %25 = arith.addf %18, %24 : vector<2x128xf32>
      %cst_24 = arith.constant 5.000000e-01 : f32
      %26 = vector.broadcast %cst_24 : f32 to vector<2x128xf32>
      %27 = arith.mulf %25, %26 : vector<2x128xf32>
      %c0_25 = arith.constant 0 : index
      %c0_26 = arith.constant 0 : index
      %28 = vector.load %arg8[%c0_25, %c0_26] : memref<128x128xf32, #tpu.memory_space<vmem>>, vector<128x128xf32>
      %cst_27 = arith.constant dense<0.000000e+00> : vector<2x128xf32>
      %29 = tpu.matmul %27, %28, %cst_27 {dimension_numbers = #tpu.dot_dimension_numbers<[1], [0], [0], [1], [0, 0, 1, 1], [], []>} : vector<2x128xf32>, vector<128x128xf32>, vector<2x128xf32> -> vector<2x128xf32>
      %c0_28 = arith.constant 0 : index
      %c0_29 = arith.constant 0 : index
      %30 = vector.load %arg9[%c0_28, %c0_29] : memref<1x128xf32, #tpu.memory_space<vmem>>, vector<1x128xf32>
      %31 = vector.broadcast %30 : vector<1x128xf32> to vector<2x128xf32>
      %32 = arith.addf %29, %31 : vector<2x128xf32>
      %c0_30 = arith.constant 0 : index
      %c0_31 = arith.constant 0 : index
      %33 = vector.load %arg10[%c0_30, %c0_31] : memref<2x128xf32, #tpu.memory_space<vmem>>, vector<2x128xf32>
      tpu.vector_store %arg10[%c0_30, %c0_31], %32 {strides = array<i32>} : memref<2x128xf32, #tpu.memory_space<vmem>>, vector<2x128xf32>,
    } else {
    }
    return
  }
  func.func @transform_0(%arg0: i32, %arg1: i32) -> (i32, i32, i32) {
    %c0_i32 = arith.constant 0 : i32
    %c0_i32_0 = arith.constant 0 : i32
    return %arg0, %arg1, %c0_i32 : i32, i32, i32
  }
  func.func @transform_1(%arg0: i32, %arg1: i32) -> (i32, i32) {
    %c0_i32 = arith.constant 0 : i32
    %c0_i32_0 = arith.constant 0 : i32
    return %arg0, %c0_i32 : i32, i32
  }
  func.func @transform_2(%arg0: i32, %arg1: i32) -> (i32, i32) {
    %c0_i32 = arith.constant 0 : i32
    %c0_i32_0 = arith.constant 0 : i32
    %c0_i32_1 = arith.constant 0 : i32
    return %c0_i32, %c0_i32_0 : i32, i32
  }
  func.func @transform_3(%arg0: i32, %arg1: i32) -> (i32, i32) {
    %c0_i32 = arith.constant 0 : i32
    %c0_i32_0 = arith.constant 0 : i32
    %c0_i32_1 = arith.constant 0 : i32
    return %c0_i32, %c0_i32_0 : i32, i32
  }
  func.func @transform_4(%arg0: i32, %arg1: i32) -> (i32, i32) {
    %c0_i32 = arith.constant 0 : i32
    %c0_i32_0 = arith.constant 0 : i32
    %c0_i32_1 = arith.constant 0 : i32
    return %c0_i32, %c0_i32_0 : i32, i32
  }
  func.func @transform_5(%arg0: i32, %arg1: i32) -> (i32, i32) {
    %c0_i32 = arith.constant 0 : i32
    %c0_i32_0 = arith.constant 0 : i32
    %c0_i32_1 = arith.constant 0 : i32
    return %c0_i32, %c0_i32_0 : i32, i32
  }
  func.func @transform_6(%arg0: i32, %arg1: i32) -> (i32, i32) {
    %c0_i32 = arith.constant 0 : i32
    %c0_i32_0 = arith.constant 0 : i32
    %c0_i32_1 = arith.constant 0 : i32
    return %c0_i32, %c0_i32_0 : i32, i32
  }
  func.func @transform_7(%arg0: i32, %arg1: i32) -> (i32, i32) {
    %c0_i32 = arith.constant 0 : i32
    %c0_i32_0 = arith.constant 0 : i32
    %c0_i32_1 = arith.constant 0 : i32
    return %c0_i32, %c0_i32_0 : i32, i32
  }
  func.func @transform_8(%arg0: i32, %arg1: i32) -> (i32, i32) {
    %c0_i32 = arith.constant 0 : i32
    %c0_i32_0 = arith.constant 0 : i32
    return %arg0, %c0_i32 : i32, i32
  }
}

</mosaic_0001>

<bundles_post_ra>
// kernel: tpu_custom_call.1
= control target key start
LH: loop header
LB: loop body
LE: loop exit
PB: predicated region body
PF: predicated region fallthrough
CT: control target
= control target key end

     0   :  { %13 = vsyncpa [#allocation4], 0  ;;  %s863_s0 = inlined_call_operand.hbm [shape: f32[2,8,32], index: 0, kind: input, shape index: {}]   ;;  %s864_s1 = inlined_call_operand.vmem [shape: f32[2,64], index: 1, kind: input, shape index: {}]   ;;  %s865_s2 = inlined_call_operand.hbm [shape: f32[32,128], index: 2, kind: input, shape index: {}]   ;;  %s866_s3 = inlined_call_operand.vmem [shape: f32[1,128], index: 3, kind: input, shape index: {}]   ;;  %s867_s4 = inlined_call_operand.hbm [shape: f32[64,128], index: 4, kind: input, shape index: {}]   ;;  %s868_s5 = inlined_call_operand.vmem [shape: f32[1,128], index: 5, kind: input, shape index: {}]   ;;  %s869_s6 = inlined_call_operand.hbm [shape: f32[128,128], index: 6, kind: input, shape index: {}]   ;;  %s870_s7 = inlined_call_operand.vmem [shape: f32[1,128], index: 7, kind: input, shape index: {}]   ;;  %s871_s8 = inlined_call_operand.hbm [shape: f32[2,128], index: 8, kind: output, shape index: {}]  }
   0x1   :  { %14 = vsyncpa [#allocation7], 0 }
   0x2   :  { %15 = vsyncpa [#allocation10], 0 }
   0x3   :  { %16 = vsyncpa [#allocation5], 0  ;;  %s684_s27 = smov [#allocation6]   ;;  %s685_s29 = smov [#allocation3]  }
   0x4   :  { %s36_s28 = sshll.u32 %s684_s27, 4  ;;  %s22_s30 = sshll.u32 %s685_s29, 4  ;;  %s37_s28 = int_to_ptr.vmem [resolvable:$true] %s36_s28  ;;  %s739_s30 = int_to_ptr.vmem [resolvable:$true] %s22_s30 }
   0x5   :  { %s566_s11 = scalar_lea.hbm %s865_s2, 512 }
   0x6   :  { %p567_p0 = scmp.ne.s32.totalorder %s865_s2, %s566_s11  ;;  %p570_p1 = scmp.lt.u32.totalorder %s566_s11, %s865_s2 }
   0x8   :  { %p572_p2 = pnand %p570_p1, %p567_p0 }
   0xa   :  { %575 = shalt.err (!%p572_p2)
}
   0xb   :  { %s576_s16 = scalar_lea.vmem %s37_s28, 512  ;;  %p581_p4 = scmp.lt.s32.totalorder %s37_s28, %s37_s28 }
   0xc   :  { %p577_p3 = scmp.ne.s32.totalorder %s37_s28, %s576_s16  ;;  %p582_p5 = scmp.lt.s32.totalorder %s576_s16, %s576_s16 }
   0xe   :  { %p583_p6 = por %p582_p5, %p581_p4 }
  0x10   :  { %p584_p7 = pnand %p583_p6, %p577_p3 }
  0x12   :  { %587 = shalt.err (!%p584_p7)
}
  0x13   :  { %s686_s17 = smov 128   ;;  %s687_s18 = smov 8  }
  0x14   :  { %42 = dma.hbm_to_vmem [thread:$0]  %s865_s2, 512, %s37_s28, [#allocation7], %s686_s17, %s686_s17, %s687_s18  }
  0x15   :  { %s588_s23 = scalar_lea.hbm %s863_s0, 256 }
  0x16   :  { %p589_p8 = scmp.ne.s32.totalorder %s863_s0, %s588_s23  ;;  %p592_p9 = scmp.lt.u32.totalorder %s588_s23, %s863_s0 }
  0x18   :  { %p594_p10 = pnand %p592_p9, %p589_p8 }
  0x1a   :  { %597 = shalt.err (!%p594_p10)
}
  0x1b   :  { %s598_s29 = scalar_lea.vmem %s739_s30, 256  ;;  %p603_p12 = scmp.lt.s32.totalorder %s739_s30, %s739_s30 }
  0x1c   :  { %p599_p11 = scmp.ne.s32.totalorder %s739_s30, %s598_s29  ;;  %p604_p13 = scmp.lt.s32.totalorder %s598_s29, %s598_s29 }
  0x1e   :  { %p605_p0 = por %p604_p13, %p603_p12 }
  0x20   :  { %p606_p1 = pnand %p605_p0, %p599_p11 }
  0x22   :  { %609 = shalt.err (!%p606_p1)
}
  0x23   :  { %28 = dma.hbm_to_vmem [thread:$0]  %s863_s0, 256, %s739_s30, [#allocation4], %s686_s17, %s686_s17, %s687_s18  }
  0x24   :  { %s688_s9 = smov [#allocation8]   ;;  %s689_s11 = smov [#allocation9]  }
  0x25   :  { %s50_s10 = sshll.u32 %s688_s9, 4  ;;  %s64_s12 = sshll.u32 %s689_s11, 4  ;;  %s51_s10 = int_to_ptr.vmem [resolvable:$true] %s50_s10  ;;  %s776_s12 = int_to_ptr.vmem [resolvable:$true] %s64_s12 }
  0x26   :  { %s610_s15 = scalar_lea.hbm %s867_s4, 1024 }
  0x27   :  { %p611_p2 = scmp.ne.s32.totalorder %s867_s4, %s610_s15  ;;  %p614_p3 = scmp.lt.u32.totalorder %s610_s15, %s867_s4 }
  0x29   :  { %p616_p4 = pnand %p614_p3, %p611_p2 }
  0x2b   :  { %619 = shalt.err (!%p616_p4)
}
  0x2c   :  { %s620_s0 = scalar_lea.vmem %s51_s10, 1024  ;;  %p625_p6 = scmp.lt.s32.totalorder %s51_s10, %s51_s10 }
  0x2d   :  { %p621_p5 = scmp.ne.s32.totalorder %s51_s10, %s620_s0  ;;  %p626_p7 = scmp.lt.s32.totalorder %s620_s0, %s620_s0 }
  0x2f   :  { %p627_p8 = por %p626_p7, %p625_p6 }
  0x31   :  { %p628_p9 = pnand %p627_p8, %p621_p5 }
  0x33   :  { %631 = shalt.err (!%p628_p9)
}
  0x34   :  { %56 = dma.hbm_to_vmem [thread:$0]  %s867_s4, 1024, %s51_s10, [#allocation7], %s686_s17, %s686_s17, %s687_s18  }
  0x35   :  { %s632_s25 = scalar_lea.hbm %s869_s6, 2048 }
  0x36   :  { %p633_p10 = scmp.ne.s32.totalorder %s869_s6, %s632_s25  ;;  %p636_p11 = scmp.lt.u32.totalorder %s632_s25, %s869_s6 }
  0x38   :  { %p638_p12 = pnand %p636_p11, %p633_p10 }
  0x3a   :  { %641 = shalt.err (!%p638_p12)
}
  0x3b   :  { %s642_s28 = scalar_lea.vmem %s776_s12, 2048  ;;  %p647_p0 = scmp.lt.s32.totalorder %s776_s12, %s776_s12 }
  0x3c   :  { %p643_p13 = scmp.ne.s32.totalorder %s776_s12, %s642_s28  ;;  %p648_p1 = scmp.lt.s32.totalorder %s642_s28, %s642_s28 }
  0x3e   :  { %p649_p2 = por %p648_p1, %p647_p0 }
  0x40   :  { %p650_p3 = pnand %p649_p2, %p643_p13 }
  0x42   :  { %653 = shalt.err (!%p650_p3)
}
  0x43   :  { %70 = dma.hbm_to_vmem [thread:$0]  %s869_s6, 2048, %s776_s12, [#allocation10], %s686_s17, %s686_s17, %s687_s18  }
  0x44   :  { %676 = dma.done.wait [#allocation4], 256  }
  0x45   :  { %677 = vsyncadd [#allocation4], 4294967040 }
  0x46   :  { %678 = dma.done.wait [#allocation7], 1536  }
  0x47   :  { %679 = vsyncadd [#allocation7], 4294965760 }
  0x48   :  { %680 = dma.done.wait [#allocation10], 2048  }
  0x49   :  { %681 = vsyncadd [#allocation10], 4294965248  ;;  %vm89_vm0 = vcmask 254976   ;;  %v690_v0 = vmov 0.0|0.0   ;;  %v691_v1 = vmov 0.0   ;;  %vm692_vm1 = vmmov 0  }
  0x4a   :  { %510 = vmatprep.subr.bf16.mxu0 %v690_v0  ;;  %90 = vst.msk [vmem:[#allocation2] sm:$0x3] %vm89_vm0, %v691_v1  ;;  %453 = vmatprep.mubr.msk.f32.mxu0 %vm692_vm1, %v691_v1  ;;  %vm94_vm2 = vcmask 261120   ;;  %v122_v2 = vld [vmem:[#allocation6] sm:$0xff]  ;;  %v123_v3 = vld [vmem:[#allocation6 + $0x8] sm:$0xff]  ;;  %v124_v4 = vld [vmem:[#allocation6 + $0x10] sm:$0xff] }
  0x4b   :  { %528 = vmatprep.subr.bf16.mxu1 %v690_v0  ;;  %507 = vmatprep.mubr.msk.f32.mxu1 %vm692_vm1, %v691_v1  ;;  %v511_v5 = vpack.c.bf16 %v123_v3, %v122_v2  ;;  %v125_v6 = vld [vmem:[#allocation6 + $0x18] sm:$0xff]  ;;  %v92_v7 = vld [vmem:[#allocation3] sm:$0xff]  ;;  %v298_v15 = vld [vmem:[#allocation9] sm:$0xff]  ;;  %vm111_vm3 = vcmask 1041409   ;;  %vm222_vm4 = vcmask 523264   ;;  %s693_s14 = smov [#allocation11]  }
  0x4c   :  { %v93_v8 = vld [vmem:[#allocation3 + $0x8] sm:$0xff]  ;;  %v95_v9 = vsel %vm94_vm2, %v92_v7, 0.0  ;;  %v514_v10 = vpack.c.bf16 %v125_v6, %v124_v4  ;;  %v299_v16 = vld [vmem:[#allocation9 + $0x8] sm:$0xff]  ;;  %v300_v19 = vld [vmem:[#allocation9 + $0x10] sm:$0xff]  ;;  %s398_s15 = sshll.u32 %s693_s14, 4  ;;  %s399_s15 = int_to_ptr.vmem [resolvable:$true] %s398_s15 }
  0x4d   :  { %512 = vmatpush3.bf16.msra.mxu0 %v511_v5  ;;  %v96_v11 = vrot.slane %v95_v9, 4  ;;  %v102_v12 = vsel %vm94_vm2, %v93_v8, 0.0  ;;  %v529_v18 = vpack.c.bf16 %v299_v16, %v298_v15  ;;  %v301_v20 = vld [vmem:[#allocation9 + $0x18] sm:$0xff]  ;;  %v302_v25 = vld [vmem:[#allocation9 + $0x20] sm:$0xff]  ;;  %v303_v26 = vld [vmem:[#allocation9 + $0x28] sm:$0xff]  ;;  %p659_p5 = scmp.lt.s32.totalorder %s399_s15, %s399_s15 }
  0x4e   :  { %513 = vmatprep.subr.bf16.mxu0 %v690_v0  ;;  %v103_v13 = vrot.slane %v102_v12, 4  ;;  %v532_v23 = vpack.c.bf16 %v301_v20, %v300_v19  ;;  %v535_v30 = vpack.c.bf16 %v303_v26, %v302_v25  ;;  %v304_v32 = vld [vmem:[#allocation9 + $0x30] sm:$0xff]  ;;  %v305_v33 = vld [vmem:[#allocation9 + $0x38] sm:$0xff]  ;;  %v306_v39 = vld [vmem:[#allocation9 + $0x40] sm:$0xff] }
  0x4f   :  { %v97_v14 = vadd.f32 %v96_v11, %v95_v9  ;;  %530 = vmatpush3.bf16.msra.mxu1 %v529_v18  ;;  %v538_v37 = vpack.c.bf16 %v305_v33, %v304_v32  ;;  %v307_v40 = vld [vmem:[#allocation9 + $0x48] sm:$0xff]  ;;  %v308_v42 = vld [vmem:[#allocation9 + $0x50] sm:$0xff]  ;;  %v309_v43 = vld [vmem:[#allocation9 + $0x58] sm:$0xff] }
  0x50   :  { %v104_v17 = vadd.f32 %v103_v13, %v102_v12  ;;  %531 = vmatprep.subr.bf16.mxu1 %v690_v0  ;;  %v541_v41 = vpack.c.bf16 %v307_v40, %v306_v39  ;;  %v207_v44 = vld [vmem:[#allocation8] sm:$0xff]  ;;  %v208_v45 = vld [vmem:[#allocation8 + $0x8] sm:$0xff]  ;;  %v544_v46 = vpack.c.bf16 %v309_v43, %v308_v42  ;;  %v209_v52 = vld [vmem:[#allocation8 + $0x10] sm:$0xff] }
  0x51   :  { %515 = vmatpush3.bf16.msra.mxu0 %v514_v10  ;;  %v98_v21 = vrot.slane %v97_v14, 2  ;;  %v91_v34 = vld [vmem:[#allocation2] sm:$0x3]  ;;  %v310_v47 = vld [vmem:[#allocation9 + $0x60] sm:$0xff]  ;;  %v517_v50 = vpack.c.bf16 %v208_v45, %v207_v44  ;;  %v210_v53 = vld [vmem:[#allocation8 + $0x18] sm:$0xff] }
  0x52   :  { %516 = vmatprep.subr.bf16.mxu0 %v690_v0  ;;  %v105_v22 = vrot.slane %v104_v17, 2  ;;  %v311_v48 = vld [vmem:[#allocation9 + $0x68] sm:$0xff]  ;;  %v520_v55 = vpack.c.bf16 %v210_v53, %v209_v52  ;;  %v211_v56 = vld [vmem:[#allocation8 + $0x20] sm:$0xff]  ;;  %v213_v59 = vld [vmem:[#allocation8 + $0x30] sm:$0xff] }
  0x53   :  { %v99_v24 = vadd.f32 %v98_v21, %v97_v14  ;;  %533 = vmatpush3.bf16.msra.mxu1 %v532_v23  ;;  %v547_v54 = vpack.c.bf16 %v311_v48, %v310_v47  ;;  %v212_v57 = vld [vmem:[#allocation8 + $0x28] sm:$0xff]  ;;  %v214_v60 = vld [vmem:[#allocation8 + $0x38] sm:$0xff]  ;;  %v312_v63 = vld [vmem:[#allocation9 + $0x70] sm:$0xff] }
  0x54   :  { %v106_v27 = vadd.f32 %v105_v22, %v104_v17  ;;  %534 = vmatprep.subr.bf16.mxu1 %v690_v0  ;;  %v523_v58 = vpack.c.bf16 %v212_v57, %v211_v56  ;;  %v526_v61 = vpack.c.bf16 %v214_v60, %v213_v59  ;;  %v206_v62 = vld [vmem:[%s864_s1] sm:$0x3] }
  0x55   :  { %v100_v28 = vrot.slane %v99_v24, 1  ;;  %v409_v3 = vld [vmem:[%s866_s3] ss:$0 sm:$0xff]  ;;  %s654_s3 = scalar_lea.vmem %s399_s15, 32 }
  0x56   :  { %v107_v29 = vrot.slane %v106_v27, 1  ;;  %v411_v4 = vld [vmem:[%s868_s5] ss:$0 sm:$0xff]  ;;  %p655_p4 = scmp.ne.s32.totalorder %s399_s15, %s654_s3  ;;  %p660_p6 = scmp.lt.s32.totalorder %s654_s3, %s654_s3 }
  0x57   :  { %v101_v31 = vadd.f32 %v100_v28, %v99_v24  ;;  %536 = vmatpush3.bf16.msra.mxu1 %v535_v30  ;;  %v413_v9 = vld [vmem:[%s870_s7] ss:$0 sm:$0xff] }
  0x58   :  { %v108_v35 = vadd.f32 %v107_v29, %v106_v27  ;;  %537 = vmatprep.subr.bf16.mxu1 %v690_v0  ;;  %p661_p7 = por %p660_p6, %p659_p5 }
  0x5a   :  { %v112_v36 = vsel %vm111_vm3, %v108_v35, %v101_v31  ;;  %p662_p8 = pnand %p661_p7, %p655_p4 }
  0x5b   :  { %v114_v38 = vadd.f32 %v112_v36, %v91_v34  ;;  %539 = vmatpush3.bf16.msra.mxu1 %v538_v37 }
  0x5c   :  { %540 = vmatprep.subr.bf16.mxu1 %v690_v0 }
  0x5d   :  { %116 = vst.msk [vmem:[#allocation2] sm:$0x3] %vm89_vm0, %v114_v38 }
  0x5f   :  { %542 = vmatpush3.bf16.msra.mxu1 %v541_v41 }
  0x60   :  { %543 = vmatprep.subr.bf16.mxu1 %v690_v0 }
  0x63   :  { %545 = vmatpush3.bf16.msra.mxu1 %v544_v46 }
  0x64   :  { %v120_v49 = vld [vmem:[#allocation2] sm:$0x3]  ;;  %546 = vmatprep.subr.bf16.mxu1 %v690_v0 }
  0x65   :  { %v121_v51 = vmul.f32 0.125, %v120_v49 }
  0x67   :  { %454 = vmatmul.mubr.msk.f32.vlgmr.msra.gmra.mrb[0].mxu0 %vm94_vm2, %v121_v51  ;;  %548 = vmatpush3.bf16.msra.mxu1 %v547_v54 }
  0x68   :  { %518 = vmatpush3.bf16.msra.mxu0 %v517_v50  ;;  %472 = vmatprep.mubr.msk.f32.mxu0 %vm692_vm1, %v691_v1  ;;  %v313_v1 = vld [vmem:[#allocation9 + $0x78] sm:$0xff] }
  0x69   :  { %519 = vmatprep.subr.bf16.mxu0 %v690_v0  ;;  %549 = vmatprep.subr.bf16.mxu1 %v690_v0  ;;  %v550_v2 = vpack.c.bf16 %v313_v1, %v312_v63 }
  0x6b   :  { %551 = vmatpush3.bf16.msra.mxu1 %v550_v2 }
  0x6c   :  { %521 = vmatpush3.bf16.msra.mxu0 %v520_v55 }
  0x6d   :  { %522 = vmatprep.subr.bf16.mxu0 %v690_v0 }
  0x70   :  { %524 = vmatpush3.bf16.msra.mxu0 %v523_v58 }
  0x71   :  { %525 = vmatprep.subr.bf16.mxu0 %v690_v0  ;;  %v552_v0 = vadd.f32 %v411_v4, %v409_v3 }
  0x74   :  { %527 = vmatpush3.bf16.msra.mxu0 %v526_v61 }
  0x77   :  { %473 = vmatmul.mubr.msk.f32.vlgmr.msra.gmra.mrb[0].mxu0 %vm222_vm4, %v206_v62 }
 0x14a   :  { %v292_v5 = vpop.f32.mrb[0].mxu0 }
 0x14b   :  { %v553_v6 = vadd.f32 %v552_v0, %v292_v5  ;;  %v474_v7 = vpop.f32.mrb[1].mxu0 }
 0x14d   :  { %v297_v8 = vmul.f32 0.5, %v553_v6 }
 0x14f   :  { %508 = vmatmul.mubr.f32.vlgmr.msra.gmra.mrb[0].mxu1 %v297_v8 }
 0x222   :  { %v387_v10 = vpop.f32.mrb[0].mxu1 }
 0x223   :  { %v388_v11 = vadd.f32 %v413_v9, %v387_v10  ;;  %v509_v12 = vpop.f32.mrb[1].mxu1 }
 0x225   :  { %391 = vst [vmem:[#allocation11] sm:$0x3] %v388_v11 }
 0x226   :  { %665 = shalt.err (!%p662_p8)
}
 0x227   :  { %s666_s19 = scalar_lea.hbm %s871_s8, 32 }
 0x228   :  { %p667_p9 = scmp.ne.s32.totalorder %s871_s8, %s666_s19  ;;  %p670_p10 = scmp.lt.u32.totalorder %s666_s19, %s871_s8 }
 0x22a   :  { %p672_p11 = pnand %p670_p10, %p667_p9 }
 0x22c   :  { %675 = shalt.err (!%p672_p11)
}
 0x22d   :  { %401 = dma.vmem_to_hbm [thread:$0]  %s399_s15, 32, %s871_s8, [#allocation5]  }
 0x22e   :  { %682 = dma.done.wait [#allocation5], 32  }
 0x22f   :  { %683 = vsyncadd [#allocation5], 4294967264 }
 0x230   :  { %405 = vsyncpa [#allocation4], 1 }
 0x231   :  { %406 = vsyncpa [#allocation7], 1 }
 0x232   :  { %407 = vsyncpa [#allocation10], 1 }
 0x233   :  { %408 = vsyncpa [#allocation5], 1 }

</bundles_post_ra>
